<compile_context>
chip_gen: v7x
topology: tpu7x:2x2x1
jax: 0.10.0
libtpu: 0.0.40
codegen_flags: <defaults>
</compile_context>

<pallas_src>
import jax
import jax.numpy as jnp
from jax.experimental import pallas as pl
from jax.experimental.pallas import tpu as pltpu

_EPS = 1e-8


def _dscl_kernel(dy_ref, q_ref, logq_ref, qlogq_ref, out_ref):
    # dy_ref:    (TBH, TNN) dynamic-stream scores (flattened maps, lane-dense)
    # q_ref:     (1,   TNN) static-stream scores              (resident constant)
    # logq_ref:  (1,   TNN) log(q + eps)            (precomputed in wrapper, hoisted)
    # qlogq_ref: (1,   TNN) q * log(q + eps)        (precomputed in wrapper, hoisted)
    p = dy_ref[...].astype(jnp.float32)
    q = q_ref[...]
    log_q = logq_ref[...]
    q_log_q = qlogq_ref[...]

    log_p = jnp.log(p + _EPS)  # only per-element transcendental left (EUP)
    # sym_kl = 0.5 * ( p*(log_p - log_q)  +  q*log_q - q*log_p )
    out = 0.5 * (p * (log_p - log_q) + (q_log_q - q * log_p))
    out_ref[...] = out.astype(out_ref.dtype)


def _round_up(x, m):
    return ((x + m - 1) // m) * m


def dual_stream_contrastive_loss(score_dy, score_st, use_diff_const=False):
    """score_dy: [B, H, N, N] or [N, N]; score_st: [N, N]. Returns elementwise sym-KL."""
    if use_diff_const:
        # TODO(synk): the diff-const branch only differs via detach() (gradient
        # semantics); its forward value is identically zero, so return zeros.
        # The detach-based backward is not representable in a forward-only kernel.
        return jnp.zeros_like(score_dy)

    # TODO(synk): no custom VJP is attached; this implements the forward pass only.

    orig_shape = score_dy.shape
    N = score_st.shape[-1]
    assert score_st.shape == (N, N), "score_st must be [N, N]"
    if score_dy.ndim == 2:
        assert score_dy.shape == (N, N)
        dy4 = score_dy.reshape(1, 1, N, N)
    else:
        assert score_dy.ndim == 4 and score_dy.shape[-2:] == (N, N)
        dy4 = score_dy

    B, H = dy4.shape[0], dy4.shape[1]
    BH = B * H
    NN = N * N
    itemsize = jnp.dtype(score_dy.dtype).itemsize
    target_bytes = 2 * 1024 * 1024  # ~2 MiB per block; fits all generations

    # ---- Lane-dense flattening: each map occupies NN lanes of one row. ------
    dy_flat = dy4.reshape(BH, NN)

    # ---- Hoist static-stream transcendentals out of the per-block compute. --
    q32 = score_st.reshape(1, NN).astype(jnp.float32)
    log_q = jnp.log(q32 + _EPS)
    q_log_q = q32 * log_q

    # ---- Lane tiling: split the lane dim only if one map exceeds the budget
    #      and a 128-aligned split is legal. -----------------------------------
    if NN * itemsize > target_bytes and NN % 128 == 0:
        tnn = max(128, (target_bytes // (8 * itemsize)) // 128 * 128)
        while NN % tnn != 0:
            tnn -= 128
    else:
        tnn = NN
    n_lane_blocks = NN // tnn

    # ---- Row (map) tiling: batch many maps per grid step, sublane-aligned. --
    tbh = max(1, target_bytes // max(tnn * itemsize, 1))
    tbh = min(tbh, _round_up(BH, 8))
    tbh = max(8, (tbh // 8) * 8)
    # Prefer >= 2 total grid steps so the 'parallel' axes can shard across
    # TensorCores on v7x megacore.
    if BH > 8 and n_lane_blocks == 1 and _round_up(BH, 8) <= tbh:
        tbh = max(8, _round_up((BH + 1) // 2, 8))

    bh_pad = _round_up(BH, tbh)
    if bh_pad != BH:
        # Zero-padding is numerically harmless here (no inf/nan) and is sliced off.
        dy_flat = jnp.pad(dy_flat, ((0, bh_pad - BH), (0, 0)))

    grid = (bh_pad // tbh, n_lane_blocks)

    out = pl.pallas_call(
        _dscl_kernel,
        out_shape=jax.ShapeDtypeStruct((bh_pad, NN), score_dy.dtype),
        grid_spec=pl.GridSpec(
            grid=grid,
            in_specs=[
                pl.BlockSpec((tbh, tnn), lambda i, j: (i, j)),
                pl.BlockSpec((1, tnn), lambda i, j: (0, j)),
                pl.BlockSpec((1, tnn), lambda i, j: (0, j)),
                pl.BlockSpec((1, tnn), lambda i, j: (0, j)),
            ],
            out_specs=pl.BlockSpec((tbh, tnn), lambda i, j: (i, j)),
        ),
        compiler_params=pltpu.CompilerParams(
            dimension_semantics=("parallel", "parallel"),
        ),
    )(dy_flat, q32, log_q, q_log_q)

    return out[:BH].reshape(orig_shape)


def _reference(score_dy, score_st):
    p = score_dy.astype(jnp.float32)
    q = score_st.astype(jnp.float32)
    kl_pq = p * (jnp.log(p + _EPS) - jnp.log(q + _EPS))
    kl_qp = q * (jnp.log(q + _EPS) - jnp.log(p + _EPS))
    return (kl_pq + kl_qp) / 2.0


if __name__ == "__main__":
    B, H, N = 2, 4, 16
    key = jax.random.PRNGKey(0)
    k_dy, k_st = jax.random.split(key)

    # Attention-score-like inputs (row-stochastic, strictly positive).
    score_dy = jax.nn.softmax(
        jax.random.normal(k_dy, (B, H, N, N), dtype=jnp.float32), axis=-1
    )
    score_st = jax.nn.softmax(
        jax.random.normal(k_st, (N, N), dtype=jnp.float32), axis=-1
    )

    out = dual_stream_contrastive_loss(score_dy, score_st)
    out = jax.block_until_ready(out)

    ref = _reference(score_dy, score_st)
    assert out.shape == (B, H, N, N)
    assert jnp.allclose(out, ref, atol=1e-5, rtol=1e-5), "mismatch vs reference"

    # Also exercise the 2-D input path ([N, N] dynamic scores).
    out2 = jax.block_until_ready(
        dual_stream_contrastive_loss(score_dy[0, 0], score_st)
    )
    assert out2.shape == (N, N)
    assert jnp.allclose(out2, ref[0, 0], atol=1e-5, rtol=1e-5), "2-D path mismatch"

    print("KERNEL_OK")
</pallas_src>

<mosaic_0001>
module attributes {stable_mosaic.version = 11 : i64} {
  func.func @_dscl_kernel(%arg0: i32, %arg1: i32, %arg2: memref<8x256xf32, #tpu.memory_space<vmem>>, %arg3: memref<1x256xf32, #tpu.memory_space<vmem>>, %arg4: memref<1x256xf32, #tpu.memory_space<vmem>>, %arg5: memref<1x256xf32, #tpu.memory_space<vmem>>, %arg6: memref<8x256xf32, #tpu.memory_space<vmem>>) attributes {dimension_semantics = [#tpu.dimension_semantics<parallel>, #tpu.dimension_semantics<parallel>], iteration_bounds = array<i64: 1, 1>, scalar_prefetch = 0 : i64, scratch_operands = 0 : i64, tpu.core_type = #tpu.core_type<tc>, window_params = [{transform_indices = @transform_0, window_bounds = array<i64: 8, 256>}, {transform_indices = @transform_1, window_bounds = array<i64: 1, 256>}, {transform_indices = @transform_2, window_bounds = array<i64: 1, 256>}, {transform_indices = @transform_3, window_bounds = array<i64: 1, 256>}, {transform_indices = @transform_4, window_bounds = array<i64: 8, 256>}]} {
    %c0 = arith.constant 0 : index
    %c0_0 = arith.constant 0 : index
    %0 = vector.load %arg2[%c0, %c0_0] : memref<8x256xf32, #tpu.memory_space<vmem>>, vector<8x256xf32>
    %c0_1 = arith.constant 0 : index
    %c0_2 = arith.constant 0 : index
    %1 = vector.load %arg3[%c0_1, %c0_2] : memref<1x256xf32, #tpu.memory_space<vmem>>, vector<1x256xf32>
    %c0_3 = arith.constant 0 : index
    %c0_4 = arith.constant 0 : index
    %2 = vector.load %arg4[%c0_3, %c0_4] : memref<1x256xf32, #tpu.memory_space<vmem>>, vector<1x256xf32>
    %c0_5 = arith.constant 0 : index
    %c0_6 = arith.constant 0 : index
    %3 = vector.load %arg5[%c0_5, %c0_6] : memref<1x256xf32, #tpu.memory_space<vmem>>, vector<1x256xf32>
    %cst = arith.constant 9.99999993E-9 : f32
    %4 = vector.broadcast %cst : f32 to vector<8x256xf32>
    %5 = arith.addf %0, %4 : vector<8x256xf32>
    %6 = math.log %5 : vector<8x256xf32>
    %7 = vector.broadcast %2 : vector<1x256xf32> to vector<8x256xf32>
    %8 = arith.subf %6, %7 : vector<8x256xf32>
    %9 = arith.mulf %0, %8 : vector<8x256xf32>
    %10 = vector.broadcast %1 : vector<1x256xf32> to vector<8x256xf32>
    %11 = arith.mulf %10, %6 : vector<8x256xf32>
    %12 = vector.broadcast %3 : vector<1x256xf32> to vector<8x256xf32>
    %13 = arith.subf %12, %11 : vector<8x256xf32>
    %14 = arith.addf %9, %13 : vector<8x256xf32>
    %cst_7 = arith.constant 5.000000e-01 : f32
    %15 = vector.broadcast %cst_7 : f32 to vector<8x256xf32>
    %16 = arith.mulf %15, %14 : vector<8x256xf32>
    %c0_8 = arith.constant 0 : index
    %c0_9 = arith.constant 0 : index
    %17 = vector.load %arg6[%c0_8, %c0_9] : memref<8x256xf32, #tpu.memory_space<vmem>>, vector<8x256xf32>
    tpu.vector_store %arg6[%c0_8, %c0_9], %16 {strides = array<i32>} : memref<8x256xf32, #tpu.memory_space<vmem>>, vector<8x256xf32>,
    return
  }
  func.func @transform_0(%arg0: i32, %arg1: i32) -> (i32, i32) {
    %c0_i32 = arith.constant 0 : i32
    return %arg0, %arg1 : i32, i32
  }
  func.func @transform_1(%arg0: i32, %arg1: i32) -> (i32, i32) {
    %c0_i32 = arith.constant 0 : i32
    %c0_i32_0 = arith.constant 0 : i32
    return %c0_i32, %arg1 : i32, i32
  }
  func.func @transform_2(%arg0: i32, %arg1: i32) -> (i32, i32) {
    %c0_i32 = arith.constant 0 : i32
    %c0_i32_0 = arith.constant 0 : i32
    return %c0_i32, %arg1 : i32, i32
  }
  func.func @transform_3(%arg0: i32, %arg1: i32) -> (i32, i32) {
    %c0_i32 = arith.constant 0 : i32
    %c0_i32_0 = arith.constant 0 : i32
    return %c0_i32, %arg1 : i32, i32
  }
  func.func @transform_4(%arg0: i32, %arg1: i32) -> (i32, i32) {
    %c0_i32 = arith.constant 0 : i32
    return %arg0, %arg1 : i32, i32
  }
}

</mosaic_0001>

<bundles_post_ra>
// kernel: tpu_custom_call.1
= control target key start
LH: loop header
LB: loop body
LE: loop exit
PB: predicated region body
PF: predicated region fallthrough
CT: control target
= control target key end

     0   :  { %9 = vsyncpa [#allocation3], 0  ;;  %s217_s0 = inlined_call_operand.hbm [shape: f32[8,256], index: 0, kind: input, shape index: {}]   ;;  %s218_s1 = inlined_call_operand.vmem [shape: f32[1,256], index: 1, kind: input, shape index: {}]   ;;  %s219_s2 = inlined_call_operand.vmem [shape: f32[1,256], index: 2, kind: input, shape index: {}]   ;;  %s220_s3 = inlined_call_operand.vmem [shape: f32[1,256], index: 3, kind: input, shape index: {}]   ;;  %s221_s4 = inlined_call_operand.hbm [shape: f32[8,256], index: 4, kind: output, shape index: {}]  }
   0x1   :  { %10 = vsyncpa [#allocation4], 0  ;;  %s157_s15 = smov [#allocation2]   ;;  %s109_s19 = scalar_lea.hbm %s217_s0, 256 }
   0x2   :  { %s17_s16 = sshll.u32 %s157_s15, 4  ;;  %p110_p0 = scmp.ne.s32.totalorder %s217_s0, %s109_s19  ;;  %s18_s16 = int_to_ptr.vmem [resolvable:$true] %s17_s16 }
   0x3   :  { %p113_p1 = scmp.lt.u32.totalorder %s109_s19, %s217_s0 }
   0x5   :  { %p115_p2 = pnand %p113_p1, %p110_p0 }
   0x7   :  { %118 = shalt.err (!%p115_p2)
}
   0x8   :  { %s119_s24 = scalar_lea.vmem %s18_s16, 256  ;;  %p124_p4 = scmp.lt.s32.totalorder %s18_s16, %s18_s16 }
   0x9   :  { %p120_p3 = scmp.ne.s32.totalorder %s18_s16, %s119_s24  ;;  %p125_p5 = scmp.lt.s32.totalorder %s119_s24, %s119_s24 }
   0xb   :  { %p126_p6 = por %p125_p5, %p124_p4 }
   0xd   :  { %p127_p7 = pnand %p126_p6, %p120_p3 }
   0xf   :  { %130 = shalt.err (!%p127_p7)
}
  0x10   :  { %20 = dma.hbm_to_vmem [thread:$0]  %s217_s0, 256, %s18_s16, [#allocation3]  }
  0x11   :  { %153 = dma.done.wait [#allocation3], 256  }
  0x12   :  { %154 = vsyncadd [#allocation3], 4294967040  ;;  %v30_v0 = vld [vmem:[#allocation2] sm:$0xff]  ;;  %v42_v1 = vlaneseq  ;;  %v31_v3 = vld [vmem:[#allocation2 + $0x8] sm:$0xff] }
  0x13   :  { %v35_v2 = vadd.f32 1e-08, %v30_v0  ;;  %v36_v4 = vadd.f32 1e-08, %v31_v3  ;;  %v32_v7 = vld [vmem:[%s218_s1] sm:$0x3] }
  0x14   :  { %v43_v5 = vshrl.u32 %v42_v1, 7  ;;  %v33_v8 = vld [vmem:[%s219_s2] sm:$0x3]  ;;  %s158_s1 = smov [#allocation5]  }
  0x15   :  { %105 = vlog2.f32 %v35_v2  ;;  %v34_v10 = vld [vmem:[%s220_s3] sm:$0x3]  ;;  %s94_s2 = sshll.u32 %s158_s1, 4  ;;  %s95_s2 = int_to_ptr.vmem [resolvable:$true] %s94_s2 }
  0x16   :  { %107 = vlog2.f32 %v36_v4  ;;  %v44_v6 = vsub.s32 0, %v43_v5  ;;  %v48_v9 = vsub.s32 1, %v43_v5  ;;  %s131_s3 = scalar_lea.vmem %s95_s2, 256  ;;  %p136_p9 = scmp.lt.s32.totalorder %s95_s2, %s95_s2 }
  0x17   :  { %p132_p8 = scmp.ne.s32.totalorder %s95_s2, %s131_s3  ;;  %p137_p10 = scmp.lt.s32.totalorder %s131_s3, %s131_s3 }
  0x18   :  { %v45_v11 = vrot.slane %v33_v8, %v44_v6  ;;  %v60_v12 = vrot.slane %v32_v7, %v44_v6  ;;  %v49_v14 = vrot.slane %v33_v8, %v48_v9  ;;  %v64_v15 = vrot.slane %v32_v7, %v48_v9 }
  0x19   :  { %v73_v18 = vrot.slane %v34_v10, %v44_v6  ;;  %v77_v20 = vrot.slane %v34_v10, %v48_v9  ;;  %p138_p11 = por %p137_p10, %p136_p9 }
  0x1b   :  { %p139_p12 = pnand %p138_p11, %p132_p8 }
  0x1f   :  { %v106_v13 = vpop.eup %105 }
  0x20   :  { %v108_v16 = vpop.eup %107  ;;  %v38_v17 = vmul.f32 0.6931472, %v106_v13 }
  0x21   :  { %v40_v19 = vmul.f32 0.6931472, %v108_v16 }
  0x22   :  { %v52_v21 = vsub.f32 %v38_v17, %v45_v11  ;;  %v67_v22 = vmul.f32 %v60_v12, %v38_v17 }
  0x23   :  { %v53_v23 = vsub.f32 %v40_v19, %v49_v14  ;;  %v68_v24 = vmul.f32 %v64_v15, %v40_v19 }
  0x24   :  { %v54_v25 = vmul.f32 %v52_v21, %v30_v0  ;;  %v80_v26 = vsub.f32 %v73_v18, %v67_v22 }
  0x25   :  { %v55_v27 = vmul.f32 %v53_v23, %v31_v3  ;;  %v81_v28 = vsub.f32 %v77_v20, %v68_v24 }
  0x26   :  { %v82_v29 = vadd.f32 %v80_v26, %v54_v25 }
  0x27   :  { %v83_v30 = vadd.f32 %v81_v28, %v55_v27 }
  0x28   :  { %v84_v31 = vmul.f32 0.5, %v82_v29 }
  0x29   :  { %v85_v32 = vmul.f32 0.5, %v83_v30 }
  0x2a   :  { %86 = vst [vmem:[#allocation5] sm:$0xff] %v84_v31 }
  0x2b   :  { %87 = vst [vmem:[#allocation5 + $0x8] sm:$0xff] %v85_v32 }
  0x2c   :  { %142 = shalt.err (!%p139_p12)
}
  0x2d   :  { %s143_s8 = scalar_lea.hbm %s221_s4, 256 }
  0x2e   :  { %p144_p13 = scmp.ne.s32.totalorder %s221_s4, %s143_s8  ;;  %p147_p0 = scmp.lt.u32.totalorder %s143_s8, %s221_s4 }
  0x30   :  { %p149_p1 = pnand %p147_p0, %p144_p13 }
  0x32   :  { %152 = shalt.err (!%p149_p1)
}
  0x33   :  { %97 = dma.vmem_to_hbm [thread:$0]  %s95_s2, 256, %s221_s4, [#allocation4]  }
  0x34   :  { %155 = dma.done.wait [#allocation4], 256  }
  0x35   :  { %156 = vsyncadd [#allocation4], 4294967040 }
  0x36   :  { %101 = vsyncpa [#allocation3], 1 }
  0x37   :  { %102 = vsyncpa [#allocation4], 1 }

</bundles_post_ra>
